<compile_context>
chip_gen: v7x
topology: tpu7x:2x2x1
jax: 0.10.0
libtpu: 0.0.40
codegen_flags: <defaults>
</compile_context>

<pallas_src>
import functools

import jax
import jax.numpy as jnp
from jax.experimental import pallas as pl
from jax.experimental.pallas import tpu as pltpu


def _grad2d_kernel(x_ref, dy_ref, dx_ref, *, penalty, NC, H, TB, TH, ACC_R):
    i = pl.program_id(0)   # slab-block index (parallel)
    j = pl.program_id(1)   # H-block index (reduction -> "arbitrary")

    @pl.when(j == 0)
    def _init():
        dy_ref[...] = jnp.zeros_like(dy_ref)
        dx_ref[...] = jnp.zeros_like(dx_ref)

    x = x_ref[...].astype(jnp.float32)          # (TB, TH, W), f32 accumulation
    W = x.shape[2]

    # Full-shape finite differences: row 0 / col 0 are exactly zero, so no
    # misaligned (TH-1, W)/(TH, W-1) temporaries and masks stay simple.
    if TH > 1:
        x_up = jnp.concatenate([x[:, :1, :], x[:, :-1, :]], axis=1)
        dy = jnp.abs(x - x_up)                  # dy[:, 0, :] == 0 (seam added in glue)
    else:
        dy = jnp.zeros_like(x)
    if W > 1:
        x_left = jnp.concatenate([x[:, :, :1], x[:, :, :-1]], axis=2)
        dx = jnp.abs(x - x_left)                # dx[:, :, 0] == 0
    else:
        dx = jnp.zeros_like(x)

    if penalty == "l2":
        dy = dy * dy
        dx = dx * dx

    # Mask slabs/rows that fall outside the real array (ragged last blocks).
    nc_idx = i * TB + jax.lax.broadcasted_iota(jnp.int32, (TB, TH, W), 0)
    h_idx = j * TH + jax.lax.broadcasted_iota(jnp.int32, (TB, TH, W), 1)
    valid = (nc_idx < NC) & (h_idx < H)
    dy = jnp.where(valid, dy, 0.0)
    dx = jnp.where(valid, dx, 0.0)

    # Fold into a vreg-shaped accumulator (keep the lane dim; the single
    # cross-lane reduce happens once, in the JAX glue).
    if ACC_R == 8:                              # TH % 8 == 0: tile-aligned fold
        pdy = dy.reshape(TB, TH // 8, 8, W).sum(axis=(0, 1)).reshape(1, 8, W)
        pdx = dx.reshape(TB, TH // 8, 8, W).sum(axis=(0, 1)).reshape(1, 8, W)
    else:
        pdy = dy.sum(axis=(0, 1), keepdims=True)   # (1, 1, W)
        pdx = dx.sum(axis=(0, 1), keepdims=True)

    dy_ref[...] += pdy
    dx_ref[...] += pdx


def grad2d_loss(pred, target=None, weight=None, *, penalty="l1", loss_weight=1.0,
                reduction="mean", target_block_bytes=2 * 1024 * 1024):
    """Pallas implementation of Grad2dLoss.forward.

    Like the PyTorch module, `target`, `weight` and `reduction` do not influence
    the returned value (forward always takes the global mean).
    """
    if reduction not in ("none", "mean", "sum"):
        raise ValueError(f"Unsupported reduction mode: {reduction}")

    N, C, H, W = pred.shape
    NC = N * C
    x3 = pred.reshape(NC, H, W)                 # free reshape; native dtype in HBM

    itemsize = jnp.dtype(pred.dtype).itemsize
    slab_bytes = H * W * itemsize

    if slab_bytes <= target_block_bytes:
        # Fuse several whole (H, W) slabs per block (~target_block_bytes each).
        TB = max(1, min(NC, target_block_bytes // slab_bytes))
        TH = H
    else:
        # Large image: tile along H with a multiple-of-8 row count.
        TB = 1
        th = max(8, target_block_bytes // max(1, W * itemsize))
        th = min(th, H)
        TH = max(8, (th // 8) * 8)

    nc_blocks = pl.cdiv(NC, TB)
    h_blocks = pl.cdiv(H, TH)
    ACC_R = 8 if TH % 8 == 0 else 1             # vreg-shaped accumulator if aligned

    block_bytes = TB * TH * W * itemsize
    vmem_limit = int(min(64 * 2**20, max(32 * 2**20, 6 * block_bytes)))

    kernel = functools.partial(
        _grad2d_kernel, penalty=penalty, NC=NC, H=H, TB=TB, TH=TH, ACC_R=ACC_R)

    dy_parts, dx_parts = pl.pallas_call(
        kernel,
        out_shape=(
            jax.ShapeDtypeStruct((nc_blocks, ACC_R, W), jnp.float32),
            jax.ShapeDtypeStruct((nc_blocks, ACC_R, W), jnp.float32),
        ),
        grid_spec=pltpu.PrefetchScalarGridSpec(
            num_scalar_prefetch=0,
            grid=(nc_blocks, h_blocks),
            in_specs=[
                pl.BlockSpec((TB, TH, W), lambda i, j: (i, j, 0)),
            ],
            out_specs=[
                pl.BlockSpec((1, ACC_R, W), lambda i, j: (i, 0, 0)),
                pl.BlockSpec((1, ACC_R, W), lambda i, j: (i, 0, 0)),
            ],
        ),
        compiler_params=pltpu.CompilerParams(
            dimension_semantics=("parallel", "arbitrary"),
            vmem_limit_bytes=vmem_limit,
        ),
    )(x3)

    sum_dy = jnp.sum(dy_parts)
    sum_dx = jnp.sum(dx_parts)

    # dy pairs that straddle two H-tiles: rows (k*TH - 1, k*TH), k = 1..h_blocks-1.
    # Tiny strided slice, computed once in plain JAX (exact, no double counting).
    if h_blocks > 1:
        top = x3[:, TH - 1:(h_blocks - 1) * TH:TH, :].astype(jnp.float32)
        bot = x3[:, TH:(h_blocks - 1) * TH + 1:TH, :].astype(jnp.float32)
        seam = jnp.abs(bot - top)
        if penalty == "l2":
            seam = seam * seam
        sum_dy = sum_dy + jnp.sum(seam)

    count_dy = float(NC * (H - 1) * W)
    count_dx = float(NC * H * (W - 1))
    d = sum_dx / count_dx + sum_dy / count_dy
    return (d * 0.5 * loss_weight).astype(jnp.float32)


def _reference(pred, penalty="l1", loss_weight=1.0):
    p = pred.astype(jnp.float32)
    dy = jnp.abs(p[:, :, 1:, :] - p[:, :, :-1, :])
    dx = jnp.abs(p[:, :, :, 1:] - p[:, :, :, :-1])
    if penalty == "l2":
        dy = dy * dy
        dx = dx * dx
    d = jnp.mean(dx) + jnp.mean(dy)
    return (d / 2.0) * loss_weight


if __name__ == "__main__":
    key = jax.random.PRNGKey(0)
    k1, k2, k3 = jax.random.split(key, 3)
    pred1 = jax.random.normal(k1, (2, 4, 16, 16), dtype=jnp.float32)
    target1 = jax.random.normal(k2, (2, 4, 16, 16), dtype=jnp.float32)  # unused by forward
    pred2 = jax.random.normal(k3, (1, 3, 13, 16), dtype=jnp.float32)

    cases = [
        # (pred, penalty, target_block_bytes)
        (pred1, "l1", 2 * 1024 * 1024),   # single fused block
        (pred1, "l2", 2 * 1024 * 1024),
        (pred1, "l1", 2048),              # multiple slab blocks (parallel axis)
        (pred1, "l1", 512),               # H tiling + cross-tile dy seams
        (pred1, "l2", 512),
        (pred2, "l1", 2048),              # ragged slab block, unaligned-H accumulator
        (pred2, "l2", 512),               # ragged H block + seams
    ]

    ok = True
    for pred, penalty, tbb in cases:
        out = jax.block_until_ready(
            grad2d_loss(pred, target1[: pred.shape[0]], penalty=penalty,
                        loss_weight=1.5, target_block_bytes=tbb))
        ref = _reference(pred, penalty=penalty, loss_weight=1.5)
        if not jnp.allclose(out, ref, rtol=1e-5, atol=1e-6):
            ok = False

    # bf16 input stays bf16 in HBM; accumulation is f32 inside the kernel.
    pred_bf16 = pred1.astype(jnp.bfloat16)
    out = jax.block_until_ready(grad2d_loss(pred_bf16, None, penalty="l1"))
    ref = _reference(pred_bf16, penalty="l1")
    if not jnp.allclose(out, ref, rtol=1e-4, atol=1e-5):
        ok = False

    if ok:
        print("KERNEL_OK")
    else:
        print("KERNEL_MISMATCH")
</pallas_src>

<mosaic_0001>
module attributes {stable_mosaic.version = 11 : i64} {
  func.func @_grad2d_kernel(%arg0: i32, %arg1: i32, %arg2: memref<8x16x16xf32, #tpu.memory_space<vmem>>, %arg3: memref<1x8x16xf32, #tpu.memory_space<vmem>>, %arg4: memref<1x8x16xf32, #tpu.memory_space<vmem>>) attributes {dimension_semantics = [#tpu.dimension_semantics<parallel>, #tpu.dimension_semantics<arbitrary>], iteration_bounds = array<i64: 1, 1>, scalar_prefetch = 0 : i64, scratch_operands = 0 : i64, tpu.core_type = #tpu.core_type<tc>, window_params = [{transform_indices = @transform_0, window_bounds = array<i64: 8, 16, 16>}, {transform_indices = @transform_1, window_bounds = array<i64: 1, 8, 16>}, {transform_indices = @transform_2, window_bounds = array<i64: 1, 8, 16>}]} {
    %c0_i32 = arith.constant 0 : i32
    %0 = arith.cmpi eq, %arg1, %c0_i32 : i32
    %1 = arith.extui %0 : i1 to i32
    %c0_i32_0 = arith.constant 0 : i32
    %2 = arith.cmpi ne, %1, %c0_i32_0 : i32
    scf.if %2 {
      %cst_20 = arith.constant 0.000000e+00 : f32
      %43 = vector.broadcast %cst_20 : f32 to vector<1x8x16xf32>
      %c0_21 = arith.constant 0 : index
      %c0_22 = arith.constant 0 : index
      %c0_23 = arith.constant 0 : index
      %44 = vector.load %arg3[%c0_21, %c0_22, %c0_23] : memref<1x8x16xf32, #tpu.memory_space<vmem>>, vector<1x8x16xf32>
      tpu.vector_store %arg3[%c0_21, %c0_22, %c0_23], %43 {strides = array<i32>} : memref<1x8x16xf32, #tpu.memory_space<vmem>>, vector<1x8x16xf32>,
      %cst_24 = arith.constant 0.000000e+00 : f32
      %45 = vector.broadcast %cst_24 : f32 to vector<1x8x16xf32>
      %c0_25 = arith.constant 0 : index
      %c0_26 = arith.constant 0 : index
      %c0_27 = arith.constant 0 : index
      %46 = vector.load %arg4[%c0_25, %c0_26, %c0_27] : memref<1x8x16xf32, #tpu.memory_space<vmem>>, vector<1x8x16xf32>
      tpu.vector_store %arg4[%c0_25, %c0_26, %c0_27], %45 {strides = array<i32>} : memref<1x8x16xf32, #tpu.memory_space<vmem>>, vector<1x8x16xf32>,
    } else {
    }
    %c0 = arith.constant 0 : index
    %c0_1 = arith.constant 0 : index
    %c0_2 = arith.constant 0 : index
    %3 = vector.load %arg2[%c0, %c0_1, %c0_2] : memref<8x16x16xf32, #tpu.memory_space<vmem>>, vector<8x16x16xf32>
    %4 = vector.extract_strided_slice %3 {offsets = [0, 0, 0], sizes = [8, 1, 16], strides = [1, 1, 1]} : vector<8x16x16xf32> to vector<8x1x16xf32>
    %5 = vector.extract_strided_slice %3 {offsets = [0, 0, 0], sizes = [8, 15, 16], strides = [1, 1, 1]} : vector<8x16x16xf32> to vector<8x15x16xf32>
    %6 = tpu.concatenate %4, %5 in 1 : vector<8x1x16xf32>, vector<8x15x16xf32> -> vector<8x16x16xf32>
    %7 = arith.subf %3, %6 : vector<8x16x16xf32>
    %8 = math.absf %7 : vector<8x16x16xf32>
    %9 = vector.extract_strided_slice %3 {offsets = [0, 0, 0], sizes = [8, 16, 1], strides = [1, 1, 1]} : vector<8x16x16xf32> to vector<8x16x1xf32>
    %10 = vector.extract_strided_slice %3 {offsets = [0, 0, 0], sizes = [8, 16, 15], strides = [1, 1, 1]} : vector<8x16x16xf32> to vector<8x16x15xf32>
    %11 = tpu.concatenate %9, %10 in 2 : vector<8x16x1xf32>, vector<8x16x15xf32> -> vector<8x16x16xf32>
    %12 = arith.subf %3, %11 : vector<8x16x16xf32>
    %13 = math.absf %12 : vector<8x16x16xf32>
    %c8_i32 = arith.constant 8 : i32
    %14 = arith.muli %arg0, %c8_i32 : i32
    %15 = tpu.iota {dimensions = array<i32: 0>} : vector<8x16x16xi32>
    %16 = vector.broadcast %14 : i32 to vector<8x16x16xi32>
    %17 = arith.addi %16, %15 : vector<8x16x16xi32>
    %c16_i32 = arith.constant 16 : i32
    %18 = arith.muli %arg1, %c16_i32 : i32
    %19 = tpu.iota {dimensions = array<i32: 1>} : vector<8x16x16xi32>
    %20 = vector.broadcast %18 : i32 to vector<8x16x16xi32>
    %21 = arith.addi %20, %19 : vector<8x16x16xi32>
    %c8_i32_3 = arith.constant 8 : i32
    %22 = vector.broadcast %c8_i32_3 : i32 to vector<8x16x16xi32>
    %23 = arith.cmpi slt, %17, %22 : vector<8x16x16xi32>
    %c16_i32_4 = arith.constant 16 : i32
    %24 = vector.broadcast %c16_i32_4 : i32 to vector<8x16x16xi32>
    %25 = arith.cmpi slt, %21, %24 : vector<8x16x16xi32>
    %26 = arith.andi %23, %25 : vector<8x16x16xi1>
    %cst = arith.constant 0.000000e+00 : f32
    %27 = vector.broadcast %cst : f32 to vector<8x16x16xf32>
    %28 = arith.select %26, %8, %27 : vector<8x16x16xi1>, vector<8x16x16xf32>
    %cst_5 = arith.constant 0.000000e+00 : f32
    %29 = vector.broadcast %cst_5 : f32 to vector<8x16x16xf32>
    %30 = arith.select %26, %13, %29 : vector<8x16x16xi1>, vector<8x16x16xf32>
    %31 = vector.shape_cast %28 : vector<8x16x16xf32> to vector<8x2x8x16xf32>
    %cst_6 = arith.constant dense<0.000000e+00> : vector<8x16xf32>
    %32 = vector.multi_reduction <add>, %31, %cst_6 [0, 1] : vector<8x2x8x16xf32> to vector<8x16xf32>
    %33 = vector.shape_cast %32 : vector<8x16xf32> to vector<1x8x16xf32>
    %34 = vector.shape_cast %30 : vector<8x16x16xf32> to vector<8x2x8x16xf32>
    %cst_7 = arith.constant dense<0.000000e+00> : vector<8x16xf32>
    %35 = vector.multi_reduction <add>, %34, %cst_7 [0, 1] : vector<8x2x8x16xf32> to vector<8x16xf32>
    %36 = vector.shape_cast %35 : vector<8x16xf32> to vector<1x8x16xf32>
    %c0_8 = arith.constant 0 : index
    %c0_9 = arith.constant 0 : index
    %c0_10 = arith.constant 0 : index
    %37 = vector.load %arg3[%c0_8, %c0_9, %c0_10] : memref<1x8x16xf32, #tpu.memory_space<vmem>>, vector<1x8x16xf32>
    %38 = arith.addf %37, %33 : vector<1x8x16xf32>
    %c0_11 = arith.constant 0 : index
    %c0_12 = arith.constant 0 : index
    %c0_13 = arith.constant 0 : index
    %39 = vector.load %arg3[%c0_11, %c0_12, %c0_13] : memref<1x8x16xf32, #tpu.memory_space<vmem>>, vector<1x8x16xf32>
    tpu.vector_store %arg3[%c0_11, %c0_12, %c0_13], %38 {strides = array<i32>} : memref<1x8x16xf32, #tpu.memory_space<vmem>>, vector<1x8x16xf32>,
    %c0_14 = arith.constant 0 : index
    %c0_15 = arith.constant 0 : index
    %c0_16 = arith.constant 0 : index
    %40 = vector.load %arg4[%c0_14, %c0_15, %c0_16] : memref<1x8x16xf32, #tpu.memory_space<vmem>>, vector<1x8x16xf32>
    %41 = arith.addf %40, %36 : vector<1x8x16xf32>
    %c0_17 = arith.constant 0 : index
    %c0_18 = arith.constant 0 : index
    %c0_19 = arith.constant 0 : index
    %42 = vector.load %arg4[%c0_17, %c0_18, %c0_19] : memref<1x8x16xf32, #tpu.memory_space<vmem>>, vector<1x8x16xf32>
    tpu.vector_store %arg4[%c0_17, %c0_18, %c0_19], %41 {strides = array<i32>} : memref<1x8x16xf32, #tpu.memory_space<vmem>>, vector<1x8x16xf32>,
    return
  }
  func.func @transform_0(%arg0: i32, %arg1: i32) -> (i32, i32, i32) {
    %c0_i32 = arith.constant 0 : i32
    %c0_i32_0 = arith.constant 0 : i32
    return %arg0, %arg1, %c0_i32 : i32, i32, i32
  }
  func.func @transform_1(%arg0: i32, %arg1: i32) -> (i32, i32, i32) {
    %c0_i32 = arith.constant 0 : i32
    %c0_i32_0 = arith.constant 0 : i32
    %c0_i32_1 = arith.constant 0 : i32
    return %arg0, %c0_i32, %c0_i32_0 : i32, i32, i32
  }
  func.func @transform_2(%arg0: i32, %arg1: i32) -> (i32, i32, i32) {
    %c0_i32 = arith.constant 0 : i32
    %c0_i32_0 = arith.constant 0 : i32
    %c0_i32_1 = arith.constant 0 : i32
    return %arg0, %c0_i32, %c0_i32_0 : i32, i32, i32
  }
}

</mosaic_0001>

<bundles_post_ra>
// kernel: tpu_custom_call.1
= control target key start
LH: loop header
LB: loop body
LE: loop exit
PB: predicated region body
PF: predicated region fallthrough
CT: control target
= control target key end

     0   :  { %8 = vsyncpa [#allocation3], 0  ;;  %s756_s0 = inlined_call_operand.hbm [shape: f32[8,16,16], index: 0, kind: input, shape index: {}]   ;;  %s757_s1 = inlined_call_operand.hbm [shape: f32[1,8,16], index: 1, kind: output, shape index: {0}]   ;;  %s758_s2 = inlined_call_operand.hbm [shape: f32[1,8,16], index: 2, kind: output, shape index: {1}]  }
   0x1   :  { %9 = vsyncpa [#allocation4], 0 }
   0x2   :  { %10 = vsyncpa [#allocation7], 0  ;;  %s494_s9 = smov [#allocation2]   ;;  %s422_s13 = scalar_lea.hbm %s756_s0, 2048 }
   0x3   :  { %s16_s10 = sshll.u32 %s494_s9, 4  ;;  %p423_p0 = scmp.ne.s32.totalorder %s756_s0, %s422_s13  ;;  %s17_s10 = int_to_ptr.vmem [resolvable:$true] %s16_s10 }
   0x4   :  { %p426_p1 = scmp.lt.u32.totalorder %s422_s13, %s756_s0 }
   0x6   :  { %p428_p2 = pnand %p426_p1, %p423_p0 }
   0x8   :  { %431 = shalt.err (!%p428_p2)
}
   0x9   :  { %s432_s18 = scalar_lea.vmem %s17_s10, 2048  ;;  %p437_p4 = scmp.lt.s32.totalorder %s17_s10, %s17_s10 }
   0xa   :  { %p433_p3 = scmp.ne.s32.totalorder %s17_s10, %s432_s18  ;;  %p438_p5 = scmp.lt.s32.totalorder %s432_s18, %s432_s18 }
   0xc   :  { %p439_p6 = por %p438_p5, %p437_p4 }
   0xe   :  { %p440_p7 = pnand %p439_p6, %p433_p3 }
  0x10   :  { %443 = shalt.err (!%p440_p7)
}
  0x11   :  { %s495_s19 = smov 128   ;;  %s496_s20 = smov 8  }
  0x12   :  { %22 = dma.hbm_to_vmem [thread:$0]  %s756_s0, 2048, %s17_s10, [#allocation3], %s495_s19, %s495_s19, %s496_s20  }
  0x13   :  { %488 = dma.done.wait [#allocation3], 2048  }
  0x14   :  { %489 = vsyncadd [#allocation3], 4294965248  ;;  %v528_v0 = vld [vmem:[#allocation2] sm:$0xff]  ;;  %vm65_vm0 = vcmask 1040384   ;;  %v530_v1 = vld [vmem:[#allocation2 + $0x10] sm:$0xff]  ;;  %s497_s23 = smov 1  }
  0x15   :  { %v532_v2 = vld [vmem:[#allocation2 + $0x8] sm:$0xff]  ;;  %146 = vrot.lane.b32.xlu0 %v528_v0, %s497_s23  ;;  %v66_v3 = vrot.slane %v528_v0, 7  ;;  %150 = vrot.lane.b32.xlu1 %v530_v1, %s497_s23  ;;  %v69_v4 = vrot.slane %v530_v1, 7  ;;  %v541_v6 = vld [vmem:[#allocation2 + $0x18] sm:$0xff]  ;;  %v543_v7 = vld [vmem:[#allocation2 + $0x20] sm:$0xff]  ;;  %vm30_vm1 = vcmask 130048  }
  0x16   :  { %v67_v5 = vrot.slane %v532_v2, 7  ;;  %v545_v8 = vld [vmem:[#allocation2 + $0x28] sm:$0xff]  ;;  %v70_v9 = vrot.slane %v541_v6, 7  ;;  %v72_v10 = vrot.slane %v543_v7, 7  ;;  %v550_v12 = vld [vmem:[#allocation2 + $0x30] sm:$0xff]  ;;  %v562_v21 = vld [vmem:[#allocation2 + $0x38] sm:$0xff] }
  0x17   :  { %v73_v11 = vrot.slane %v545_v8, 7  ;;  %v106_v13 = vsel %vm65_vm0, %v528_v0, %v66_v3  ;;  %v107_v14 = vsel %vm65_vm0, %v530_v1, %v69_v4  ;;  %v75_v16 = vrot.slane %v550_v12, 7  ;;  %v586_v41 = vld [vmem:[#allocation2 + $0x40] sm:$0xff]  ;;  %v588_v42 = vld [vmem:[#allocation2 + $0x48] sm:$0xff]  ;;  %v594_v47 = vld [vmem:[#allocation2 + $0x50] sm:$0xff]  ;;  %s499_s0 = smov [#allocation5]  }
  0x18   :  { %v68_v15 = vsel %vm65_vm0, %v66_v3, %v67_v5  ;;  %v114_v17 = vsub.f32 %v528_v0, %v106_v13  ;;  %v116_v18 = vsub.f32 %v530_v1, %v107_v14  ;;  %v71_v20 = vsel %vm65_vm0, %v69_v4, %v70_v9  ;;  %v598_v51 = vld [vmem:[#allocation2 + $0x58] sm:$0xff]  ;;  %v610_v59 = vld [vmem:[#allocation2 + $0x60] sm:$0xff]  ;;  %v617_v5 = vld [vmem:[#allocation2 + $0x68] sm:$0xff]  ;;  %s392_s24 = sshll.u32 %s499_s0, 4  ;;  %s393_s24 = int_to_ptr.vmem [resolvable:$true] %s392_s24 }
  0x19   :  { %v115_v19 = vsub.f32 %v532_v2, %v68_v15  ;;  %148 = vrot.lane.b32.xlu0 %v532_v2, %s497_s23  ;;  %152 = vrot.lane.b32.xlu1 %v541_v6, %s497_s23  ;;  %v117_v22 = vsub.f32 %v541_v6, %v71_v20  ;;  %v108_v23 = vsel %vm65_vm0, %v543_v7, %v72_v10  ;;  %v76_v25 = vrot.slane %v562_v21, 7  ;;  %v622_v14 = vld [vmem:[#allocation2 + $0x70] sm:$0xff]  ;;  %s444_s25 = scalar_lea.vmem %s393_s24, 128  ;;  %p449_p9 = scmp.lt.s32.totalorder %s393_s24, %s393_s24 }
  0x1a   :  { %v74_v24 = vsel %vm65_vm0, %v72_v10, %v73_v11  ;;  %v130_v26 = vand.u32 2147483647, %v114_v17  ;;  %v132_v27 = vand.u32 2147483647, %v116_v18  ;;  %v118_v29 = vsub.f32 %v543_v7, %v108_v23  ;;  %p445_p8 = scmp.ne.s32.totalorder %s393_s24, %s444_s25  ;;  %p450_p10 = scmp.lt.s32.totalorder %s444_s25, %s444_s25 }
  0x1b   :  { %v131_v28 = vand.u32 2147483647, %v115_v19  ;;  %v133_v30 = vand.u32 2147483647, %v117_v22  ;;  %v119_v31 = vsub.f32 %v545_v8, %v74_v24  ;;  %v109_v32 = vsel %vm65_vm0, %v550_v12, %v75_v16  ;;  %v633_v22 = vld [vmem:[#allocation2 + $0x78] sm:$0xff] }
  0x1c   :  { %v77_v33 = vsel %vm65_vm0, %v75_v16, %v76_v25  ;;  %v318_v34 = vsel %vm30_vm1, %v130_v26, 0.0  ;;  %v321_v36 = vsel %vm30_vm1, %v132_v27, 0.0  ;;  %v134_v37 = vand.u32 2147483647, %v118_v29  ;;  %p451_p11 = por %p450_p10, %p449_p9 }
  0x1d   :  { %v319_v35 = vsel %vm30_vm1, %v131_v28, 0.0  ;;  %154 = vrot.lane.b32.xlu0 %v543_v7, %s497_s23  ;;  %v135_v39 = vand.u32 2147483647, %v119_v31  ;;  %156 = vrot.lane.b32.xlu1 %v545_v8, %s497_s23  ;;  %v120_v40 = vsub.f32 %v550_v12, %v109_v32  ;;  %v323_v43 = vsel %vm30_vm1, %v133_v30, 0.0 }
  0x1e   :  { %v320_v38 = vadd.f32 %v319_v35, %v318_v34  ;;  %v121_v44 = vsub.f32 %v562_v21, %v77_v33  ;;  %v78_v45 = vrot.slane %v586_v41, 7  ;;  %v79_v46 = vrot.slane %v588_v42, 7  ;;  %p452_p12 = pnand %p451_p11, %p445_p8 }
  0x1f   :  { %v325_v49 = vsel %vm30_vm1, %v134_v37, 0.0  ;;  %v81_v50 = vrot.slane %v594_v47, 7  ;;  %v136_v52 = vand.u32 2147483647, %v120_v40  ;;  %v82_v55 = vrot.slane %v598_v51, 7 }
  0x20   :  { %v322_v48 = vadd.f32 %v321_v36, %v320_v38  ;;  %v110_v53 = vsel %vm65_vm0, %v586_v41, %v78_v45  ;;  %v80_v54 = vsel %vm65_vm0, %v78_v45, %v79_v46  ;;  %v327_v57 = vsel %vm30_vm1, %v135_v39, 0.0 }
  0x21   :  { %158 = vrot.lane.b32.xlu0 %v550_v12, %s497_s23  ;;  %160 = vrot.lane.b32.xlu1 %v562_v21, %s497_s23  ;;  %v122_v58 = vsub.f32 %v586_v41, %v110_v53  ;;  %v137_v60 = vand.u32 2147483647, %v121_v44  ;;  %v123_v61 = vsub.f32 %v588_v42, %v80_v54  ;;  %v111_v62 = vsel %vm65_vm0, %v594_v47, %v81_v50 }
  0x22   :  { %v324_v56 = vadd.f32 %v323_v43, %v322_v48  ;;  %v84_v63 = vrot.slane %v610_v59, 7  ;;  %v83_v4 = vsel %vm65_vm0, %v81_v50, %v82_v55  ;;  %v329_v9 = vsel %vm30_vm1, %v136_v52, 0.0 }
  0x23   :  { %v138_v10 = vand.u32 2147483647, %v122_v58  ;;  %v124_v11 = vsub.f32 %v594_v47, %v111_v62  ;;  %v85_v13 = vrot.slane %v617_v5, 7  ;;  %v87_v17 = vrot.slane %v622_v14, 7 }
  0x24   :  { %v326_v3 = vadd.f32 %v325_v49, %v324_v56  ;;  %v112_v16 = vsel %vm65_vm0, %v610_v59, %v84_v63  ;;  %v331_v18 = vsel %vm30_vm1, %v137_v60, 0.0  ;;  %v139_v19 = vand.u32 2147483647, %v123_v61 }
  0x25   :  { %162 = vrot.lane.b32.xlu0 %v586_v41, %s497_s23  ;;  %164 = vrot.lane.b32.xlu1 %v588_v42, %s497_s23  ;;  %v125_v20 = vsub.f32 %v598_v51, %v83_v4  ;;  %v86_v24 = vsel %vm65_vm0, %v84_v63, %v85_v13  ;;  %v88_v25 = vrot.slane %v633_v22, 7  ;;  %v333_v26 = vsel %vm30_vm1, %v138_v10, 0.0 }
  0x26   :  { %v328_v15 = vadd.f32 %v327_v57, %v326_v3  ;;  %v140_v27 = vand.u32 2147483647, %v124_v11  ;;  %v126_v28 = vsub.f32 %v610_v59, %v112_v16  ;;  %v498_v29 = vmov 0.0  }
  0x27   :  { %31 = vst.msk [vmem:[#allocation5] sm:$0xff] %vm30_vm1, %v498_v29  ;;  %32 = vst.msk [vmem:[#allocation6] sm:$0xff] %vm30_vm1, %v498_v29  ;;  %v113_v31 = vsel %vm65_vm0, %v622_v14, %v87_v17  ;;  %v335_v32 = vsel %vm30_vm1, %v139_v19, 0.0  ;;  %v141_v33 = vand.u32 2147483647, %v125_v20  ;;  %v127_v34 = vsub.f32 %v617_v5, %v86_v24 }
  0x28   :  { %v330_v23 = vadd.f32 %v329_v9, %v328_v15  ;;  %v89_v36 = vsel %vm65_vm0, %v87_v17, %v88_v25  ;;  %v337_v37 = vsel %vm30_vm1, %v140_v27, 0.0  ;;  %v142_v38 = vand.u32 2147483647, %v126_v28 }
  0x29   :  { %166 = vrot.lane.b32.xlu0 %v594_v47, %s497_s23  ;;  %168 = vrot.lane.b32.xlu1 %v598_v51, %s497_s23  ;;  %v128_v39 = vsub.f32 %v622_v14, %v113_v31  ;;  %v339_v43 = vsel %vm30_vm1, %v141_v33, 0.0  ;;  %v143_v44 = vand.u32 2147483647, %v127_v34  ;;  %v129_v45 = vsub.f32 %v633_v22, %v89_v36 }
  0x2a   :  { %v332_v30 = vadd.f32 %v331_v18, %v330_v23  ;;  %v341_v49 = vsel %vm30_vm1, %v142_v38, 0.0 }
  0x2b   :  { %v144_v48 = vand.u32 2147483647, %v128_v39  ;;  %v343_v52 = vsel %vm30_vm1, %v143_v44, 0.0  ;;  %v145_v53 = vand.u32 2147483647, %v129_v45 }
  0x2c   :  { %v334_v35 = vadd.f32 %v333_v26, %v332_v30 }
  0x2d   :  { %170 = vrot.lane.b32.xlu0 %v610_v59, %s497_s23  ;;  %172 = vrot.lane.b32.xlu1 %v617_v5, %s497_s23  ;;  %v345_v55 = vsel %vm30_vm1, %v144_v48, 0.0  ;;  %v347_v57 = vsel %vm30_vm1, %v145_v53, 0.0 }
  0x2e   :  { %v336_v40 = vadd.f32 %v335_v32, %v334_v35  ;;  %v380_v60 = vld [vmem:[#allocation5] sm:$0xff] }
  0x30   :  { %v338_v46 = vadd.f32 %v337_v37, %v336_v40 }
  0x31   :  { %174 = vrot.lane.b32.xlu0 %v622_v14, %s497_s23  ;;  %176 = vrot.lane.b32.xlu1 %v633_v22, %s497_s23 }
  0x32   :  { %v340_v50 = vadd.f32 %v339_v43, %v338_v46 }
  0x34   :  { %v342_v54 = vadd.f32 %v341_v49, %v340_v50 }
  0x36   :  { %v344_v56 = vadd.f32 %v343_v52, %v342_v54 }
  0x38   :  { %v346_v58 = vadd.f32 %v345_v55, %v344_v56 }
  0x3a   :  { %v348_v61 = vadd.f32 %v347_v57, %v346_v58 }
  0x3c   :  { %v381_v62 = vadd.f32 %v380_v60, %v348_v61 }
  0x3e   :  { %382 = vst.msk [vmem:[#allocation5] sm:$0xff] %vm30_vm1, %v381_v62 }
  0x3f   :  { %455 = shalt.err (!%p452_p12)
}
  0x40   :  { %s456_s28 = scalar_lea.hbm %s757_s1, 128 }
  0x41   :  { %p457_p13 = scmp.ne.s32.totalorder %s757_s1, %s456_s28  ;;  %p460_p0 = scmp.lt.u32.totalorder %s456_s28, %s757_s1 }
  0x43   :  { %p462_p1 = pnand %p460_p0, %p457_p13 }
  0x45   :  { %465 = shalt.err (!%p462_p1)
}
  0x46   :  { %395 = dma.vmem_to_hbm [thread:$0]  %s393_s24, 128, %s757_s1, [#allocation4]   ;;  %vm194_vm2 = vcmask 7168  }
  0x47   :  { %s500_s1 = smov [#allocation6]  }
  0x48   :  { %s402_s7 = sshll.u32 %s500_s1, 4  ;;  %s403_s7 = int_to_ptr.vmem [resolvable:$true] %s402_s7 }
  0x49   :  { %s466_s8 = scalar_lea.vmem %s403_s7, 128  ;;  %p471_p3 = scmp.lt.s32.totalorder %s403_s7, %s403_s7 }
  0x4a   :  { %p467_p2 = scmp.ne.s32.totalorder %s403_s7, %s466_s8  ;;  %p472_p4 = scmp.lt.s32.totalorder %s466_s8, %s466_s8 }
  0x4c   :  { %p473_p5 = por %p472_p4, %p471_p3 }
  0x4e   :  { %p474_p6 = pnand %p473_p5, %p467_p2 }
  0x87   :  { %v147_v63 = vpop.permute.xlu0 %146  ;;  %v151_v3 = vpop.permute.xlu1 %150 }
  0x88   :  { %v195_v4 = vsel %vm194_vm2, %v528_v0, %v147_v63  ;;  %v197_v9 = vsel %vm194_vm2, %v530_v1, %v151_v3 }
  0x89   :  { %v211_v10 = vsub.f32 %v528_v0, %v195_v4  ;;  %v213_v11 = vsub.f32 %v530_v1, %v197_v9 }
  0x8b   :  { %v149_v13 = vpop.permute.xlu0 %148  ;;  %v153_v15 = vpop.permute.xlu1 %152  ;;  %v227_v18 = vand.u32 2147483647, %v211_v10  ;;  %v229_v23 = vand.u32 2147483647, %v213_v11 }
  0x8c   :  { %v196_v16 = vsel %vm194_vm2, %v532_v2, %v149_v13  ;;  %v198_v17 = vsel %vm194_vm2, %v541_v6, %v153_v15 }
  0x8d   :  { %v212_v19 = vsub.f32 %v532_v2, %v196_v16  ;;  %v214_v20 = vsub.f32 %v541_v6, %v198_v17  ;;  %v349_v28 = vsel %vm30_vm1, %v227_v18, 0.0  ;;  %v352_v31 = vsel %vm30_vm1, %v229_v23, 0.0 }
  0x8f   :  { %v228_v24 = vand.u32 2147483647, %v212_v19  ;;  %v230_v25 = vand.u32 2147483647, %v214_v20  ;;  %v155_v26 = vpop.permute.xlu0 %154  ;;  %v157_v0 = vpop.permute.xlu1 %156 }
  0x90   :  { %v199_v1 = vsel %vm194_vm2, %v543_v7, %v155_v26  ;;  %v200_v27 = vsel %vm194_vm2, %v545_v8, %v157_v0 }
  0x91   :  { %v350_v29 = vsel %vm30_vm1, %v228_v24, 0.0  ;;  %v215_v30 = vsub.f32 %v543_v7, %v199_v1  ;;  %v216_v2 = vsub.f32 %v545_v8, %v200_v27  ;;  %v354_v32 = vsel %vm30_vm1, %v230_v25, 0.0 }
  0x92   :  { %v351_v6 = vadd.f32 %v350_v29, %v349_v28 }
  0x93   :  { %v231_v33 = vand.u32 2147483647, %v215_v30  ;;  %v232_v34 = vand.u32 2147483647, %v216_v2  ;;  %v159_v35 = vpop.permute.xlu0 %158  ;;  %v161_v36 = vpop.permute.xlu1 %160 }
  0x94   :  { %v353_v37 = vadd.f32 %v352_v31, %v351_v6  ;;  %v201_v38 = vsel %vm194_vm2, %v550_v12, %v159_v35  ;;  %v202_v39 = vsel %vm194_vm2, %v562_v21, %v161_v36 }
  0x95   :  { %v356_v7 = vsel %vm30_vm1, %v231_v33, 0.0  ;;  %v217_v8 = vsub.f32 %v550_v12, %v201_v38  ;;  %v218_v40 = vsub.f32 %v562_v21, %v202_v39  ;;  %v358_v44 = vsel %vm30_vm1, %v232_v34, 0.0  ;;  %v383_v38 = vld [vmem:[#allocation6] sm:$0xff] }
  0x96   :  { %v355_v43 = vadd.f32 %v354_v32, %v353_v37 }
  0x97   :  { %v233_v45 = vand.u32 2147483647, %v217_v8  ;;  %v234_v46 = vand.u32 2147483647, %v218_v40  ;;  %v163_v48 = vpop.permute.xlu0 %162  ;;  %v165_v49 = vpop.permute.xlu1 %164 }
  0x98   :  { %v357_v50 = vadd.f32 %v356_v7, %v355_v43  ;;  %v203_v52 = vsel %vm194_vm2, %v586_v41, %v163_v48  ;;  %v204_v53 = vsel %vm194_vm2, %v588_v42, %v165_v49 }
  0x99   :  { %v360_v54 = vsel %vm30_vm1, %v233_v45, 0.0  ;;  %v219_v12 = vsub.f32 %v586_v41, %v203_v52  ;;  %v220_v21 = vsub.f32 %v588_v42, %v204_v53  ;;  %v362_v56 = vsel %vm30_vm1, %v234_v46, 0.0 }
  0x9a   :  { %v359_v55 = vadd.f32 %v358_v44, %v357_v50 }
  0x9b   :  { %v235_v57 = vand.u32 2147483647, %v219_v12  ;;  %v236_v58 = vand.u32 2147483647, %v220_v21  ;;  %v167_v60 = vpop.permute.xlu0 %166  ;;  %v169_v61 = vpop.permute.xlu1 %168 }
  0x9c   :  { %v361_v62 = vadd.f32 %v360_v54, %v359_v55  ;;  %v205_v63 = vsel %vm194_vm2, %v594_v47, %v167_v60  ;;  %v206_v3 = vsel %vm194_vm2, %v598_v51, %v169_v61 }
  0x9d   :  { %v364_v4 = vsel %vm30_vm1, %v235_v57, 0.0  ;;  %v221_v41 = vsub.f32 %v594_v47, %v205_v63  ;;  %v222_v42 = vsub.f32 %v598_v51, %v206_v3  ;;  %v366_v10 = vsel %vm30_vm1, %v236_v58, 0.0 }
  0x9e   :  { %v363_v9 = vadd.f32 %v362_v56, %v361_v62 }
  0x9f   :  { %v237_v11 = vand.u32 2147483647, %v221_v41  ;;  %v238_v13 = vand.u32 2147483647, %v222_v42  ;;  %v171_v15 = vpop.permute.xlu0 %170  ;;  %v173_v16 = vpop.permute.xlu1 %172 }
  0xa0   :  { %v365_v17 = vadd.f32 %v364_v4, %v363_v9  ;;  %v207_v18 = vsel %vm194_vm2, %v610_v59, %v171_v15  ;;  %v208_v19 = vsel %vm194_vm2, %v617_v5, %v173_v16 }
  0xa1   :  { %v368_v20 = vsel %vm30_vm1, %v237_v11, 0.0  ;;  %v223_v47 = vsub.f32 %v610_v59, %v207_v18  ;;  %v224_v51 = vsub.f32 %v617_v5, %v208_v19  ;;  %v370_v24 = vsel %vm30_vm1, %v238_v13, 0.0 }
  0xa2   :  { %v367_v23 = vadd.f32 %v366_v10, %v365_v17 }
  0xa3   :  { %v239_v25 = vand.u32 2147483647, %v223_v47  ;;  %v240_v26 = vand.u32 2147483647, %v224_v51  ;;  %v175_v0 = vpop.permute.xlu0 %174  ;;  %v177_v1 = vpop.permute.xlu1 %176 }
  0xa4   :  { %v369_v27 = vadd.f32 %v368_v20, %v367_v23  ;;  %v209_v28 = vsel %vm194_vm2, %v622_v14, %v175_v0  ;;  %v210_v29 = vsel %vm194_vm2, %v633_v22, %v177_v1 }
  0xa5   :  { %v372_v30 = vsel %vm30_vm1, %v239_v25, 0.0  ;;  %v225_v59 = vsub.f32 %v622_v14, %v209_v28  ;;  %v226_v5 = vsub.f32 %v633_v22, %v210_v29  ;;  %v374_v6 = vsel %vm30_vm1, %v240_v26, 0.0 }
  0xa6   :  { %v371_v2 = vadd.f32 %v370_v24, %v369_v27 }
  0xa7   :  { %v241_v31 = vand.u32 2147483647, %v225_v59  ;;  %v242_v32 = vand.u32 2147483647, %v226_v5 }
  0xa8   :  { %v373_v33 = vadd.f32 %v372_v30, %v371_v2 }
  0xa9   :  { %v376_v34 = vsel %vm30_vm1, %v241_v31, 0.0  ;;  %v378_v36 = vsel %vm30_vm1, %v242_v32, 0.0 }
  0xaa   :  { %v375_v35 = vadd.f32 %v374_v6, %v373_v33 }
  0xac   :  { %v377_v37 = vadd.f32 %v376_v34, %v375_v35 }
  0xae   :  { %v379_v39 = vadd.f32 %v378_v36, %v377_v37 }
  0xb0   :  { %v384_v7 = vadd.f32 %v383_v38, %v379_v39 }
  0xb2   :  { %385 = vst.msk [vmem:[#allocation6] sm:$0xff] %vm30_vm1, %v384_v7 }
  0xb3   :  { %477 = shalt.err (!%p474_p6)
}
  0xb4   :  { %s478_s11 = scalar_lea.hbm %s758_s2, 128 }
  0xb5   :  { %p479_p7 = scmp.ne.s32.totalorder %s758_s2, %s478_s11  ;;  %p482_p8 = scmp.lt.u32.totalorder %s478_s11, %s758_s2 }
  0xb7   :  { %p484_p9 = pnand %p482_p8, %p479_p7 }
  0xb9   :  { %487 = shalt.err (!%p484_p9)
}
  0xba   :  { %405 = dma.vmem_to_hbm [thread:$0]  %s403_s7, 128, %s758_s2, [#allocation7]  }
  0xbb   :  { %490 = dma.done.wait [#allocation4], 128  }
  0xbc   :  { %491 = vsyncadd [#allocation4], 4294967168 }
  0xbd   :  { %492 = dma.done.wait [#allocation7], 128  }
  0xbe   :  { %493 = vsyncadd [#allocation7], 4294967168 }
  0xbf   :  { %412 = vsyncpa [#allocation3], 1 }
  0xc0   :  { %413 = vsyncpa [#allocation4], 1 }
  0xc1   :  { %414 = vsyncpa [#allocation7], 1 }

</bundles_post_ra>
